<compile_context>
chip_gen: v6e
topology: v6e:2x2x1
jax: 0.10.0
libtpu: 0.0.40
codegen_flags: <defaults>
</compile_context>

<pallas_src>
import jax
import jax.numpy as jnp
from jax.experimental import pallas as pl
from jax.experimental.pallas import tpu as pltpu


def attention_fusion_kernel(xw_ref, xs_ref, wa_ref, wi_ref, params_ref, bp_ref,
                            o_ref):
    # Hoist all parameter reads; params block rows:
    #   0: ba  1: bi  2: Wp[0,:128]  3: Wp[0,128:]  4: Wp[1,:128]  5: Wp[1,128:]
    wa = wa_ref[...]
    wi = wi_ref[...]
    ba = params_ref[0:1, :]
    bi = params_ref[1:2, :]
    wpa_a = params_ref[2:3, :]
    wpa_i = params_ref[3:4, :]
    wpi_a = params_ref[4:5, :]
    wpi_i = params_ref[5:6, :]
    bpa = bp_ref[0]
    bpi = bp_ref[1]

    # Projections (MXU matmuls, f32 accumulation) + bias.
    xa = jnp.dot(xw_ref[...], wa, preferred_element_type=jnp.float32) + ba  # (bm,128)
    xi = jnp.dot(xs_ref[...], wi, preferred_element_type=jnp.float32) + bi  # (bm,128)

    # prob_* linears on the concatenated (bm,256) features, expressed as VPU
    # products + a single fused XLU lane-reduce per logit (sum distributes).
    logit_a = jnp.sum(xa * wpa_a + xi * wpa_i, axis=-1, keepdims=True) + bpa  # (bm,1)
    logit_i = jnp.sum(xa * wpi_a + xi * wpi_i, axis=-1, keepdims=True) + bpi  # (bm,1)

    p_a = jax.nn.sigmoid(logit_a)   # EUP
    p_i = jax.nn.sigmoid(logit_i)

    # Lane-dense 256-wide output slab.
    o_ref[:, 0:128] = (p_a * xa).astype(o_ref.dtype)
    o_ref[:, 128:256] = (p_i * xi).astype(o_ref.dtype)


def _round_up(x, m):
    return (x + m - 1) // m * m


def _num_tensorcores():
    # Heuristic: v7x has 2 TensorCores per chip, v5e/v6e have 1.
    try:
        kind = (getattr(jax.devices()[0], "device_kind", "") or "").lower()
        if "v7" in kind:
            return 2
    except Exception:
        pass
    return 1


def attention_fusion(x_w2v, x_spctr, Wa, ba, Wi, bi, Wp, bp, *,
                     bm=None, use_bf16=True, out_dtype=jnp.float32):
    B, Dw = x_w2v.shape
    _, Ds = x_spctr.shape

    align = 16 if use_bf16 else 8                 # bf16 packs 2 rows / sublane
    if bm is None:
        bm = 2048 if use_bf16 else 1024           # fits default 32 MiB scoped VMEM

    # Pad only to the sublane multiple (<= align-1 rows, negligible copy),
    # NOT to a multiple of bm -- the grid handles a ragged last block.
    B_pad = _round_up(B, align)
    if B_pad != B:
        pad = B_pad - B
        x_w2v = jnp.pad(x_w2v, ((0, pad), (0, 0)))
        x_spctr = jnp.pad(x_spctr, ((0, pad), (0, 0)))

    if use_bf16:
        # Halves HBM traffic for x and W; matmul still accumulates in f32.
        x_w2v = x_w2v.astype(jnp.bfloat16)
        x_spctr = x_spctr.astype(jnp.bfloat16)
        Wa = Wa.astype(jnp.bfloat16)
        Wi = Wi.astype(jnp.bfloat16)

    bm = min(_round_up(bm, align), B_pad)
    steps = pl.cdiv(B_pad, bm)

    # Only on 2-TensorCore chips: keep an even number of grid steps so both
    # cores get equal work (skip on single-TC v5e/v6e -- there it only adds
    # per-step overhead).
    if _num_tensorcores() >= 2:
        if steps == 1 and B_pad >= 2 * align:
            steps = 2
        elif steps > 1 and steps % 2 == 1:
            steps += 1
        bm = min(_round_up(pl.cdiv(B_pad, steps), align), B_pad)
        steps = pl.cdiv(B_pad, bm)

    grid = (steps,)

    # Pack ba / bi / Wp into one (8, 128) f32 parameter block (gating math in f32).
    ba_f = jnp.asarray(ba, jnp.float32).reshape(-1)
    bi_f = jnp.asarray(bi, jnp.float32).reshape(-1)
    Wp_f = jnp.asarray(Wp, jnp.float32)
    params = jnp.stack(
        [ba_f, bi_f, Wp_f[0, 0:128], Wp_f[0, 128:256], Wp_f[1, 0:128],
         Wp_f[1, 128:256]], axis=0)
    params = jnp.pad(params, ((0, 2), (0, 0)))    # (8, 128)
    bp_f = jnp.asarray(bp, jnp.float32).reshape(2)

    single = pl.Buffered(1)   # constant-index blocks: fetched once, single buffer

    out = pl.pallas_call(
        attention_fusion_kernel,
        out_shape=jax.ShapeDtypeStruct((B_pad, 256), out_dtype),
        grid_spec=pltpu.PrefetchScalarGridSpec(
            num_scalar_prefetch=0,
            grid=grid,
            in_specs=[
                pl.BlockSpec((bm, Dw), lambda i: (i, 0)),                          # x_w2v
                pl.BlockSpec((bm, Ds), lambda i: (i, 0)),                          # x_spctr
                pl.BlockSpec((Dw, 128), lambda i: (0, 0), pipeline_mode=single),   # Wa
                pl.BlockSpec((Ds, 128), lambda i: (0, 0), pipeline_mode=single),   # Wi
                pl.BlockSpec((8, 128), lambda i: (0, 0), pipeline_mode=single),    # packed params
                pl.BlockSpec(memory_space=pltpu.SMEM),                             # bp scalars
            ],
            out_specs=pl.BlockSpec((bm, 256), lambda i: (i, 0)),
        ),
        compiler_params=pltpu.CompilerParams(
            dimension_semantics=("parallel",)),
    )(x_w2v, x_spctr, Wa, Wi, params, bp_f)

    return out[:B]


def attention_fusion_ref(x_w2v, x_spctr, Wa, ba, Wi, bi, Wp, bp):
    xa = x_w2v @ Wa + ba
    xi = x_spctr @ Wi + bi
    cat = jnp.concatenate([xa, xi], axis=1)
    p_a = jax.nn.sigmoid(cat @ Wp[0:1].T + bp[0])
    p_i = jax.nn.sigmoid(cat @ Wp[1:2].T + bp[1])
    return jnp.concatenate([p_a * xa, p_i * xi], axis=1)


if __name__ == "__main__":
    # Module-default feature dims (768), small batch not divisible by 8/16 so
    # the minimal-padding + ragged-grid paths are exercised.
    B, Dw, Ds = 20, 768, 768
    key = jax.random.PRNGKey(0)
    ks = jax.random.split(key, 8)

    x_w2v = jax.random.normal(ks[0], (B, Dw), dtype=jnp.float32)
    x_spctr = jax.random.normal(ks[1], (B, Ds), dtype=jnp.float32)

    Wa = jax.random.normal(ks[2], (Dw, 128), dtype=jnp.float32) * 0.05
    ba = jax.random.normal(ks[3], (1, 128), dtype=jnp.float32) * 0.05
    Wi = jax.random.normal(ks[4], (Ds, 128), dtype=jnp.float32) * 0.05
    bi = jax.random.normal(ks[5], (1, 128), dtype=jnp.float32) * 0.05
    Wp = jax.random.normal(ks[6], (2, 256), dtype=jnp.float32) * 0.05   # rows: prob_audio, prob_img
    bp = jax.random.normal(ks[7], (2,), dtype=jnp.float32) * 0.05

    ref = attention_fusion_ref(x_w2v, x_spctr, Wa, ba, Wi, bi, Wp, bp)

    # f32 path, tight tolerance, ragged last block (B_pad=24, bm=16 -> 2 steps).
    out_f32 = attention_fusion(x_w2v, x_spctr, Wa, ba, Wi, bi, Wp, bp,
                               bm=16, use_bf16=False)
    out_f32 = jax.block_until_ready(out_f32)
    assert out_f32.shape == (B, 256)
    assert jnp.allclose(out_f32, ref, atol=1e-4, rtol=1e-4)

    # Production default: bf16 inputs/weights, f32 accumulation (looser tol).
    out_bf16 = attention_fusion(x_w2v, x_spctr, Wa, ba, Wi, bi, Wp, bp)
    out_bf16 = jax.block_until_ready(out_bf16)
    assert out_bf16.shape == (B, 256)
    assert jnp.allclose(out_bf16, ref, atol=5e-2, rtol=5e-2)

    # bf16 with an explicit small tile to exercise a multi-step bf16 grid.
    out_bf16_small = attention_fusion(x_w2v, x_spctr, Wa, ba, Wi, bi, Wp, bp,
                                      bm=16)
    out_bf16_small = jax.block_until_ready(out_bf16_small)
    assert out_bf16_small.shape == (B, 256)
    assert jnp.allclose(out_bf16_small, ref, atol=5e-2, rtol=5e-2)

    print("KERNEL_OK")
</pallas_src>

<mosaic_0001>
module attributes {stable_mosaic.version = 11 : i64} {
  func.func @attention_fusion_kernel(%arg0: i32, %arg1: memref<16x768xf32, #tpu.memory_space<vmem>>, %arg2: memref<16x768xf32, #tpu.memory_space<vmem>>, %arg3: memref<768x128xf32, #tpu.memory_space<vmem>>, %arg4: memref<768x128xf32, #tpu.memory_space<vmem>>, %arg5: memref<8x128xf32, #tpu.memory_space<vmem>>, %arg6: memref<2xf32, #tpu.memory_space<smem>>, %arg7: memref<16x256xf32, #tpu.memory_space<vmem>>) attributes {dimension_semantics = [#tpu.dimension_semantics<parallel>], iteration_bounds = array<i64: 2>, scalar_prefetch = 0 : i64, scratch_operands = 0 : i64, tpu.core_type = #tpu.core_type<tc>, window_params = [{transform_indices = @transform_0, window_bounds = array<i64: 16, 768>}, {transform_indices = @transform_1, window_bounds = array<i64: 16, 768>}, {pipeline_mode = #tpu.pipeline_mode<synchronous>, transform_indices = @transform_2, window_bounds = array<i64: 768, 128>}, {pipeline_mode = #tpu.pipeline_mode<synchronous>, transform_indices = @transform_3, window_bounds = array<i64: 768, 128>}, {pipeline_mode = #tpu.pipeline_mode<synchronous>, transform_indices = @transform_4, window_bounds = array<i64: 8, 128>}, {transform_indices = @transform_5, window_bounds = array<i64: 2>}, {transform_indices = @transform_6, window_bounds = array<i64: 16, 256>}]} {
    %c0 = arith.constant 0 : index
    %c0_0 = arith.constant 0 : index
    %0 = vector.load %arg3[%c0, %c0_0] : memref<768x128xf32, #tpu.memory_space<vmem>>, vector<768x128xf32>
    %c0_1 = arith.constant 0 : index
    %c0_2 = arith.constant 0 : index
    %1 = vector.load %arg4[%c0_1, %c0_2] : memref<768x128xf32, #tpu.memory_space<vmem>>, vector<768x128xf32>
    %c0_3 = arith.constant 0 : index
    %c0_4 = arith.constant 0 : index
    %2 = vector.load %arg5[%c0_3, %c0_4] : memref<8x128xf32, #tpu.memory_space<vmem>>, vector<1x128xf32>
    %c1 = arith.constant 1 : index
    %c0_5 = arith.constant 0 : index
    %3 = vector.load %arg5[%c1, %c0_5] : memref<8x128xf32, #tpu.memory_space<vmem>>, vector<1x128xf32>
    %c2 = arith.constant 2 : index
    %c0_6 = arith.constant 0 : index
    %4 = vector.load %arg5[%c2, %c0_6] : memref<8x128xf32, #tpu.memory_space<vmem>>, vector<1x128xf32>
    %c3 = arith.constant 3 : index
    %c0_7 = arith.constant 0 : index
    %5 = vector.load %arg5[%c3, %c0_7] : memref<8x128xf32, #tpu.memory_space<vmem>>, vector<1x128xf32>
    %c4 = arith.constant 4 : index
    %c0_8 = arith.constant 0 : index
    %6 = vector.load %arg5[%c4, %c0_8] : memref<8x128xf32, #tpu.memory_space<vmem>>, vector<1x128xf32>
    %c5 = arith.constant 5 : index
    %c0_9 = arith.constant 0 : index
    %7 = vector.load %arg5[%c5, %c0_9] : memref<8x128xf32, #tpu.memory_space<vmem>>, vector<1x128xf32>
    %c0_10 = arith.constant 0 : index
    %8 = memref.load %arg6[%c0_10] : memref<2xf32, #tpu.memory_space<smem>>
    %c1_11 = arith.constant 1 : index
    %9 = memref.load %arg6[%c1_11] : memref<2xf32, #tpu.memory_space<smem>>
    %c0_12 = arith.constant 0 : index
    %c0_13 = arith.constant 0 : index
    %10 = vector.load %arg1[%c0_12, %c0_13] : memref<16x768xf32, #tpu.memory_space<vmem>>, vector<16x768xf32>
    %cst = arith.constant dense<0.000000e+00> : vector<16x128xf32>
    %11 = tpu.matmul %10, %0, %cst {dimension_numbers = #tpu.dot_dimension_numbers<[1], [0], [0], [1], [0, 0, 1, 1], [], []>} : vector<16x768xf32>, vector<768x128xf32>, vector<16x128xf32> -> vector<16x128xf32>
    %12 = vector.broadcast %2 : vector<1x128xf32> to vector<16x128xf32>
    %13 = arith.addf %11, %12 : vector<16x128xf32>
    %c0_14 = arith.constant 0 : index
    %c0_15 = arith.constant 0 : index
    %14 = vector.load %arg2[%c0_14, %c0_15] : memref<16x768xf32, #tpu.memory_space<vmem>>, vector<16x768xf32>
    %cst_16 = arith.constant dense<0.000000e+00> : vector<16x128xf32>
    %15 = tpu.matmul %14, %1, %cst_16 {dimension_numbers = #tpu.dot_dimension_numbers<[1], [0], [0], [1], [0, 0, 1, 1], [], []>} : vector<16x768xf32>, vector<768x128xf32>, vector<16x128xf32> -> vector<16x128xf32>
    %16 = vector.broadcast %3 : vector<1x128xf32> to vector<16x128xf32>
    %17 = arith.addf %15, %16 : vector<16x128xf32>
    %18 = vector.broadcast %4 : vector<1x128xf32> to vector<16x128xf32>
    %19 = arith.mulf %13, %18 : vector<16x128xf32>
    %20 = vector.broadcast %5 : vector<1x128xf32> to vector<16x128xf32>
    %21 = arith.mulf %17, %20 : vector<16x128xf32>
    %22 = arith.addf %19, %21 : vector<16x128xf32>
    %cst_17 = arith.constant dense<0.000000e+00> : vector<16xf32>
    %23 = vector.multi_reduction <add>, %22, %cst_17 [1] : vector<16x128xf32> to vector<16xf32>
    %24 = vector.shape_cast %23 : vector<16xf32> to vector<16x1xf32>
    %25 = vector.broadcast %8 : f32 to vector<16x1xf32>
    %26 = arith.addf %24, %25 : vector<16x1xf32>
    %27 = vector.broadcast %6 : vector<1x128xf32> to vector<16x128xf32>
    %28 = arith.mulf %13, %27 : vector<16x128xf32>
    %29 = vector.broadcast %7 : vector<1x128xf32> to vector<16x128xf32>
    %30 = arith.mulf %17, %29 : vector<16x128xf32>
    %31 = arith.addf %28, %30 : vector<16x128xf32>
    %cst_18 = arith.constant dense<0.000000e+00> : vector<16xf32>
    %32 = vector.multi_reduction <add>, %31, %cst_18 [1] : vector<16x128xf32> to vector<16xf32>
    %33 = vector.shape_cast %32 : vector<16xf32> to vector<16x1xf32>
    %34 = vector.broadcast %9 : f32 to vector<16x1xf32>
    %35 = arith.addf %33, %34 : vector<16x1xf32>
    %36 = arith.negf %26 : vector<16x1xf32>
    %37 = math.exp %36 : vector<16x1xf32>
    %cst_19 = arith.constant 1.000000e+00 : f32
    %38 = vector.broadcast %cst_19 : f32 to vector<16x1xf32>
    %39 = arith.addf %38, %37 : vector<16x1xf32>
    %40 = arith.divf %38, %39 : vector<16x1xf32>
    %41 = arith.negf %35 : vector<16x1xf32>
    %42 = math.exp %41 : vector<16x1xf32>
    %cst_20 = arith.constant 1.000000e+00 : f32
    %43 = vector.broadcast %cst_20 : f32 to vector<16x1xf32>
    %44 = arith.addf %43, %42 : vector<16x1xf32>
    %45 = arith.divf %43, %44 : vector<16x1xf32>
    %46 = vector.broadcast %40 : vector<16x1xf32> to vector<16x128xf32>
    %47 = arith.mulf %46, %13 : vector<16x128xf32>
    %c0_21 = arith.constant 0 : index
    %c0_22 = arith.constant 0 : index
    %48 = vector.load %arg7[%c0_21, %c0_22] : memref<16x256xf32, #tpu.memory_space<vmem>>, vector<16x128xf32>
    tpu.vector_store %arg7[%c0_21, %c0_22], %47 {strides = array<i32>} : memref<16x256xf32, #tpu.memory_space<vmem>>, vector<16x128xf32>,
    %49 = vector.broadcast %45 : vector<16x1xf32> to vector<16x128xf32>
    %50 = arith.mulf %49, %17 : vector<16x128xf32>
    %c0_23 = arith.constant 0 : index
    %c128 = arith.constant 128 : index
    %51 = vector.load %arg7[%c0_23, %c128] : memref<16x256xf32, #tpu.memory_space<vmem>>, vector<16x128xf32>
    tpu.vector_store %arg7[%c0_23, %c128], %50 {strides = array<i32>} : memref<16x256xf32, #tpu.memory_space<vmem>>, vector<16x128xf32>,
    return
  }
  func.func @transform_0(%arg0: i32) -> (i32, i32) {
    %c0_i32 = arith.constant 0 : i32
    %c0_i32_0 = arith.constant 0 : i32
    return %arg0, %c0_i32 : i32, i32
  }
  func.func @transform_1(%arg0: i32) -> (i32, i32) {
    %c0_i32 = arith.constant 0 : i32
    %c0_i32_0 = arith.constant 0 : i32
    return %arg0, %c0_i32 : i32, i32
  }
  func.func @transform_2(%arg0: i32) -> (i32, i32) {
    %c0_i32 = arith.constant 0 : i32
    %c0_i32_0 = arith.constant 0 : i32
    %c0_i32_1 = arith.constant 0 : i32
    return %c0_i32, %c0_i32_0 : i32, i32
  }
  func.func @transform_3(%arg0: i32) -> (i32, i32) {
    %c0_i32 = arith.constant 0 : i32
    %c0_i32_0 = arith.constant 0 : i32
    %c0_i32_1 = arith.constant 0 : i32
    return %c0_i32, %c0_i32_0 : i32, i32
  }
  func.func @transform_4(%arg0: i32) -> (i32, i32) {
    %c0_i32 = arith.constant 0 : i32
    %c0_i32_0 = arith.constant 0 : i32
    %c0_i32_1 = arith.constant 0 : i32
    return %c0_i32, %c0_i32_0 : i32, i32
  }
  func.func @transform_5(%arg0: i32) -> i32 {
    %c0_i32 = arith.constant 0 : i32
    %c0_i32_0 = arith.constant 0 : i32
    return %c0_i32 : i32
  }
  func.func @transform_6(%arg0: i32) -> (i32, i32) {
    %c0_i32 = arith.constant 0 : i32
    %c0_i32_0 = arith.constant 0 : i32
    return %arg0, %c0_i32 : i32, i32
  }
}

</mosaic_0001>

<bundles_post_ra>
// kernel: tpu_custom_call.1
= control target key start
LH: loop header
LB: loop body
LE: loop exit
PB: predicated region body
PF: predicated region fallthrough
CT: control target
= control target key end

     0   :  { %s2304_s0 = inlined_call_operand.hbm [shape: f32[24,768], index: 0, kind: input, shape index: {}]   ;;  %s2305_s1 = inlined_call_operand.hbm [shape: f32[24,768], index: 1, kind: input, shape index: {}]   ;;  %s2306_s2 = inlined_call_operand.hbm [shape: f32[768,128], index: 2, kind: input, shape index: {}]   ;;  %s2307_s3 = inlined_call_operand.hbm [shape: f32[768,128], index: 3, kind: input, shape index: {}]   ;;  %s2308_s4 = inlined_call_operand.hbm [shape: f32[8,128], index: 4, kind: input, shape index: {}]   ;;  %s2309_s5 = inlined_call_operand.vmem [shape: f32[2], index: 5, kind: input, shape index: {}]   ;;  %s2310_s6 = inlined_call_operand.hbm [shape: f32[24,256], index: 6, kind: output, shape index: {}]  }
   0x1   :  { %2314 = sst [smem:[#allocation20_spill]] %s2304_s0 }
   0x2   :  { %2315 = sst [smem:[#allocation21_spill]] %s2307_s3 }
   0x3   :  { %11 = vsyncpa [#allocation3], 0 }
   0x4   :  { %13 = vsyncpa [#allocation3 + $0x1], 0 }
   0x5   :  { %14 = vsyncpa [#allocation7], 0 }
   0x6   :  { %16 = vsyncpa [#allocation7 + $0x1], 0 }
   0x7   :  { %17 = vsyncpa [#allocation10], 0 }
   0x8   :  { %18 = vsyncpa [#allocation5], 0 }
   0x9   :  { %19 = vsyncpa [#allocation4], 0 }
   0xa   :  { %21 = vsyncpa [#allocation4 + $0x1], 0  ;;  %s1980_s21 = smov 0   ;;  %s1982_s22 = smov 0  }
   0xb   :  { %s1984_s23 = smov 0   ;;  %s1986_s24 = smov 0  }
   0xc LB: > { %s2001_s25 = sadd.s32 4294967295, %s1928_s24   ;;  %s1313_s26 = sadd.s32 4294967294, %s1928_s24   ;;  %s1928_s24 = sphi %s1986_s24, %s2339_s24   ;;  %s1924_s23 = sphi %s1984_s23, %s2338_s23   ;;  %s1920_s22 = sphi %s1982_s22, %s2337_s22   ;;  %s1916_s21 = sphi %s1980_s21, %s2336_s21  }
   0xd   : > { %s2005_s27 = sadd.s32 1, %s1928_s24   ;;  %s34_s28 = sadd.s32 1, %s1924_s23 }
   0xe   : > { %s31_s29 = ssub.s32 %s1928_s24, %s2005_s27  ;;  %p41_p0 = scmp.ne.s32.totalorder %s1924_s23, %s1920_s22 }
   0xf   : > { %p32_p1 = scmp.eq.s32.totalorder %s31_s29, 0  ;;  %p42_p2 = scmp.eq.s32.totalorder %s1928_s24, 0 }
  0x10   : > { %p47_p3 = scmp.ne.s32.totalorder %s1920_s22, %s1916_s21  ;;  %p2311_p4 = scmp.eq.s32.totalorder %s2001_s25, 0 }
  0x11   : > { %s2017_s30 = scalar_select %p32_p1, %s1924_s23, %s34_s28  }
  0x12   : > { %p2019_p5 = por %p42_p2, %p41_p0  ;;  %p2025_p6 = por %p2311_p4, %p47_p3 }
  0x13   : > { %p181_p7 = scmp.eq.s32.totalorder %s2001_s25, 1  ;;  %p187_p8 = scmp.eq.s32.totalorder %s1313_s26, 1 }
  0x14   : > { %s2316_s7 = scalar_select %p2019_p5, 1, 0 }
  0x15   : > { %s2317_s8 = scalar_select %p2025_p6, 1, 0 }
  0x16   : > { %p1314_p9 = scmp.ge.s32.totalorder %s1928_s24, 1  ;;  %p194_p10 = scmp.lt.s32.totalorder %s1928_s24, 3 }
  0x17   : > { %p2032_p11 = por %p181_p7, %p41_p0  ;;  %p2036_p12 = por %p187_p8, %p47_p3 }
  0x18   : > { %p2040_p13 = pnand %p1314_p9, %p194_p10  ;;  %s1930_s12 = smov [#allocation9]  }
  0x19   : > { %s2318_s9 = scalar_select %p2032_p11, 1, 0 }
  0x1a   : > { %s2319_s10 = scalar_select %p2036_p12, 1, 0 }
  0x1b   : > { %s2320_s11 = scalar_select %p2040_p13, 1, 0 }
  0x1c   : > { %p1617_p1 = pneg %p2040_p13  ;;  %s219_s13 = sshll.u32 %s1930_s12, 4  ;;  %s220_s13 = int_to_ptr.vmem [resolvable:$true] %s219_s13 }
  0x1d   : > { %s1931_s15 = smov [#allocation8]   ;;  %s1714_s17 = scalar_lea.vmem %s220_s13, 12288 }
  0x1e   : > { %p2048_p2 = pnand %p1617_p1, %p2311_p4  ;;  %s206_s16 = sshll.u32 %s1931_s15, 4  ;;  %s207_s16 = int_to_ptr.vmem [resolvable:$true] %s206_s16 }
  0x1f   : > { %p1715_p3 = scmp.ne.s32.totalorder %s220_s13, %s1714_s17  ;;  %p1722_p9 = scmp.lt.s32.totalorder %s220_s13, %s220_s13 }
  0x20   : > { %p1705_p0 = pneg %p2048_p2  ;;  %p1723_p10 = scmp.lt.s32.totalorder %s1714_s17, %s1714_s17 }
  0x22   : > { %p1717_p7 = pnand %p1715_p3, %p1705_p0  ;;  %p1724_p1 = por %p1723_p10, %p1722_p9 }
  0x24   : > { %p1718_p8 = pneg %p1717_p7 }
  0x26   : > { %p1725_p4 = pnand %p1724_p1, %p1718_p8 }
  0x28   : > { %1728 = shalt.err (!%p1725_p4)
}
  0x29   : > { %s1932_s18 = smov 128   ;;  %s1933_s19 = smov 8  }
  0x2a   : > { %s2322_s3 = sld [smem:[#allocation21_spill]]  ;;  %s1740_s28 = scalar_lea.vmem %s207_s16, 12288 }
  0x2b   : > { %p1741_p12 = scmp.ne.s32.totalorder %s207_s16, %s1740_s28  ;;  %p1748_p11 = scmp.lt.s32.totalorder %s207_s16, %s207_s16 }
  0x2c   : > { %p1749_p6 = scmp.lt.s32.totalorder %s1740_s28, %s1740_s28 }
  0x2d   : > { %p1743_p3 = pnand %p1741_p12, %p1705_p0 }
  0x2e   : > { %p1750_p9 = por %p1749_p6, %p1748_p11 }
  0x2f   : > { %p1744_p7 = pneg %p1743_p3 }
  0x30   : > { %1623 = dma.hbm_to_vmem [thread:$0]  (!%p2048_p2), %s2322_s3, 12288, %s220_s13, [#allocation10], %s1932_s18, %s1932_s18, %s1933_s19  }
  0x31   : > { %p1751_p8 = pnand %p1750_p9, %p1744_p7 }
  0x33   : > { %1754 = shalt.err (!%p1751_p8)
}
  0x34   : > { %1620 = dma.hbm_to_vmem [thread:$0]  (!%p2048_p2), %s2306_s2, 12288, %s207_s16, [#allocation7], %s1932_s18, %s1932_s18, %s1933_s19  }
  0x35   : > { %s1934_s15 = smov [#allocation11]   ;;  %s244_s26 = sshll.u32 %s2309_s5, 4  ;;  %s245_s26 = int_to_ptr.vmem [resolvable:$true] %s244_s26 }
  0x36   : > { %s233_s13 = sshll.u32 %s1934_s15, 4  ;;  %s234_s13 = int_to_ptr.vmem [resolvable:$true] %s233_s13 }
  0x37   : > { %s1766_s3 = scalar_lea.vmem %s234_s13, 128  ;;  %p1774_p12 = scmp.lt.s32.totalorder %s234_s13, %s234_s13 }
  0x38   : > { %p1767_p4 = scmp.ne.s32.totalorder %s234_s13, %s1766_s3  ;;  %p1775_p10 = scmp.lt.s32.totalorder %s1766_s3, %s1766_s3 }
  0x3a   : > { %p1769_p6 = pnand %p1767_p4, %p1705_p0  ;;  %p1776_p1 = por %p1775_p10, %p1774_p12 }
  0x3c   : > { %p1770_p11 = pneg %p1769_p6 }
  0x3e   : > { %p1777_p3 = pnand %p1776_p1, %p1770_p11 }
  0x40   : > { %1780 = shalt.err (!%p1777_p3)
}
  0x41   : > { %1626 = dma.hbm_to_vmem [thread:$0]  (!%p2048_p2), %s2308_s4, 128, %s234_s13, [#allocation10]  }
  0x42   : > { %s1781_s19 = scalar_lea.vmem %s245_s26, 16  ;;  %p1789_p4 = scmp.lt.s32.totalorder %s245_s26, %s245_s26 }
  0x43   : > { %p1782_p7 = scmp.ne.s32.totalorder %s245_s26, %s1781_s19  ;;  %p1790_p6 = scmp.lt.s32.totalorder %s1781_s19, %s1781_s19 }
  0x45   : > { %p1784_p9 = pnand %p1782_p7, %p1705_p0  ;;  %p1791_p13 = por %p1790_p6, %p1789_p4 }
  0x47   : > { %p1785_p8 = pneg %p1784_p9 }
  0x49   : > { %p1792_p5 = pnand %p1791_p13, %p1785_p8 }
  0x4b   : > { %1795 = shalt.err (!%p1792_p5)
}
  0x4c   : > { %s1935_s3 = smov [#allocation12]   ;;  %p1319_p11 = scmp.ge.s32.totalorder %s1928_s24, 2 }
  0x4d   : > { %1629 = dma.vmem_to_smem (!%p2048_p2), %s245_s26, 16, %s1935_s3, [#allocation5]  }
  0x4e   : > { %251 = sbr.rel (%p1319_p11) target bundleno = 158 (0x9e), region = 32  ;;  %p2323_p12 = scmp.ne.s32.totalorder (!%p1319_p11), %s2316_s7, 0 }
  0x53   : > { %254 = sbr.rel (!%p2323_p12) target bundleno = 122 (0x7a), region = 36  ;;  %s255_s28 = sand.u32 (%p2323_p12), 1, %s1924_s23  }
  0x54   : > { %s1320_s29 = sshll.u32 (%p2323_p12), %s1928_s24, 1  ;;  %s1593_s12 = smul.u32 (%p2323_p12), 96, %s255_s28 }
  0x55   : > { %s261_s15 = ssub.s32 (%p2323_p12), 3, %s1320_s29  ;;  %s2096_s17 = scalar_lea.sflag (%p2323_p12), [#allocation3], %s255_s28 }
  0x56   : > { %p262_p13 = scmp.lt.s32.totalorder (%p2323_p12), %s261_s15, 2  ;;  %s259_s20 = scalar_lea.vmem (%p2323_p12), [#allocation2], %s1593_s12 }
  0x58   : > { %s2341_s15 = smov (!%p262_p13, %s261_s15), 2 }
  0x59   : > { %s2093_s13 = smul.u32 768, %s2341_s15 }
  0x5b   : > { %s267_s14 = ssub.s32 1536, %s2093_s13 }
  0x5c   : > { %268 = vsyncadd %s2096_s17, %s267_s14  ;;  %p1323_p5 = scmp.ne.s32.totalorder %s2093_s13, 0  ;;  %s1594_s26 = smul.u32 1536, %s1928_s24 }
  0x5d   : > { %s274_s16 = sshll.u32 %s259_s20, 4  ;;  %s2324_s0 = sld [smem:[#allocation20_spill]]  ;;  %s2106_s16 = int_to_ptr.vmem [resolvable:$true] %s274_s16 }
  0x63   : > { %s2104_s3 = scalar_lea.hbm %s2324_s0, %s1594_s26  ;;  %s1800_s15 = scalar_lea.hbm %s2324_s0, 2304 }
  0x64   : > { %s1796_s28 = scalar_lea.hbm %s2104_s3, %s2093_s13  ;;  %p1801_p1 = scmp.lt.s32.totalorder %s2104_s3, %s2324_s0 }
  0x65   : > { %p1797_p2 = scmp.ne.s32.totalorder %s2104_s3, %s1796_s28  ;;  %p1802_p3 = scmp.lt.s32.totalorder %s1800_s15, %s1796_s28 }
  0x67   : > { %p1798_p0 = pnand %p1797_p2, %p1323_p5  ;;  %p1803_p7 = por %p1802_p3, %p1801_p1 }
  0x69   : > { %p1799_p10 = pneg %p1798_p0 }
  0x6b   : > { %p1804_p9 = pnand %p1803_p7, %p1799_p10 }
  0x6d   : > { %1807 = shalt.err (!%p1804_p9)
}
  0x6e   : > { %s1808_s26 = scalar_lea.vmem %s2106_s16, %s2093_s13  ;;  %s1936_s18 = smov [#allocation2]  }
  0x6f   : > { %p1809_p8 = scmp.ne.s32.totalorder %s2106_s16, %s1808_s26  ;;  %s1812_s19 = sshll.u32 %s1936_s18, 4  ;;  %s1813_s19 = int_to_ptr.vmem [resolvable:$false] %s1812_s19 }
  0x70   : > { %s1814_s29 = scalar_lea.vmem %s1813_s19, 3072  ;;  %p1815_p12 = scmp.lt.s32.totalorder %s2106_s16, %s1813_s19 }
  0x71   : > { %p1810_p4 = pnand %p1809_p8, %p1323_p5  ;;  %p1816_p13 = scmp.lt.s32.totalorder %s1814_s29, %s1808_s26 }
  0x73   : > { %p1811_p6 = pneg %p1810_p4  ;;  %p1817_p2 = por %p1816_p13, %p1815_p12 }
  0x75   : > { %p1818_p0 = pnand %p1817_p2, %p1811_p6 }
  0x77   : > { %1821 = shalt.err (!%p1818_p0)
}
  0x78   : > { %s1937_s28 = smov 768   ;;  %s1938_s12 = smov 48  }
  0x79   : > { %280 = dma.hbm_to_vmem [thread:$0]  (%p1323_p5), %s2104_s3, %s2093_s13, %s2106_s16, %s2096_s17, %s1937_s28, %s1937_s28, %s1938_s12  }
  0x7a PF: > { %p2325_p10 = scmp.ne.s32.totalorder %s2316_s7, 0 }
  0x7b   : > { %s284_s15 = sand.u32 (%p2325_p10), 1, %s1928_s24   ;;  %s286_s14 = sand.u32 (%p2325_p10), 1, %s1924_s23  }
  0x7c   : > { %283 = sbr.rel (!%p2325_p10) target bundleno = 158 (0x9e), region = 40  ;;  %s1327_s26 = sshll.u32 (%p2325_p10), %s1928_s24, 1 }
  0x7d   : > { %s1595_s20 = smul.u32 (%p2325_p10), 96, %s286_s14  ;;  %s290_s18 = ssub.s32 (%p2325_p10), 3, %s1327_s26 }
  0x7e   : > { %p291_p1 = scmp.lt.s32.totalorder (%p2325_p10), %s290_s18, 2  ;;  %s2140_s0 = scalar_lea.sflag (%p2325_p10), [#allocation7], %s284_s15 }
  0x7f   : > { %s288_s13 = scalar_lea.vmem (%p2325_p10), [#allocation6], %s1595_s20 }
  0x81   : > { %s2343_s18 = smov (!%p291_p1, %s290_s18), 2 }
  0x82   : > { %s2137_s19 = smul.u32 768, %s2343_s18 }
  0x84   : > { %s296_s29 = ssub.s32 1536, %s2137_s19 }
  0x85   : > { %297 = vsyncadd %s2140_s0, %s296_s29  ;;  %p1330_p5 = scmp.ne.s32.totalorder %s2137_s19, 0  ;;  %s1596_s7 = smul.u32 1536, %s1928_s24 }
  0x86   : > { %s303_s17 = sshll.u32 %s288_s13, 4  ;;  %s1826_s20 = scalar_lea.hbm %s2305_s1, 2304  ;;  %s2150_s17 = int_to_ptr.vmem [resolvable:$true] %s303_s17 }
  0x87   : > { %s2148_s28 = scalar_lea.hbm %s2305_s1, %s1596_s7 }
  0x88   : > { %s1822_s12 = scalar_lea.hbm %s2148_s28, %s2137_s19  ;;  %p1827_p8 = scmp.lt.s32.totalorder %s2148_s28, %s2305_s1 }
  0x89   : > { %p1823_p3 = scmp.ne.s32.totalorder %s2148_s28, %s1822_s12  ;;  %p1828_p4 = scmp.lt.s32.totalorder %s1826_s20, %s1822_s12 }
  0x8b   : > { %p1824_p7 = pnand %p1823_p3, %p1330_p5  ;;  %p1829_p6 = por %p1828_p4, %p1827_p8 }
  0x8d   : > { %p1825_p9 = pneg %p1824_p7 }
  0x8f   : > { %p1830_p12 = pnand %p1829_p6, %p1825_p9 }
  0x91   : > { %1833 = shalt.err (!%p1830_p12)
}
  0x92   : > { %s1834_s29 = scalar_lea.vmem %s2150_s17, %s2137_s19  ;;  %s1939_s13 = smov [#allocation6]  }
  0x93   : > { %p1835_p13 = scmp.ne.s32.totalorder %s2150_s17, %s1834_s29  ;;  %s1838_s7 = sshll.u32 %s1939_s13, 4  ;;  %s1839_s7 = int_to_ptr.vmem [resolvable:$false] %s1838_s7 }
  0x94   : > { %s1840_s16 = scalar_lea.vmem %s1839_s7, 3072  ;;  %p1841_p10 = scmp.lt.s32.totalorder %s2150_s17, %s1839_s7 }
  0x95   : > { %p1836_p2 = pnand %p1835_p13, %p1330_p5  ;;  %p1842_p1 = scmp.lt.s32.totalorder %s1840_s16, %s1834_s29 }
  0x97   : > { %p1837_p0 = pneg %p1836_p2  ;;  %p1843_p3 = por %p1842_p1, %p1841_p10 }
  0x99   : > { %p1844_p7 = pnand %p1843_p3, %p1837_p0 }
  0x9b   : > { %1847 = shalt.err (!%p1844_p7)
}
  0x9c   : > { %s1940_s3 = smov 768   ;;  %s1941_s12 = smov 48  }
  0x9d   : > { %309 = dma.hbm_to_vmem [thread:$0]  (%p1330_p5), %s2148_s28, %s2137_s19, %s2150_s17, %s2140_s0, %s1940_s3, %s1940_s3, %s1941_s12  }
  0x9e PF: > { %p2326_p9 = scmp.ne.s32.totalorder %s2320_s11, 0 }
  0x9f   : > { %s2179_s15 = sand.u32 (!%p2326_p9), 1, %s1920_s22   ;;  %p2327_p8 = scmp.ne.s32.totalorder (!%p2326_p9), %s2317_s8, 0 }
  0xa0   : > { %315 = sbr.rel (%p2326_p9) target bundleno = 700 (0x2bc), region = 44  ;;  %s318_s20 = scalar_lea.sflag (!%p2326_p9), [#allocation3], %s2179_s15 }
  0xa1   : > { %s1597_s14 = smul.u32 (!%p2326_p9), 96, %s2179_s15 }
  0xa3   : > { %s2183_s26 = scalar_lea.vmem (!%p2326_p9), [#allocation2], %s1597_s14 }
  0xa5   : > { %1891 = dma.done.wait (%p2327_p8), %s318_s20, 1536  }
  0xa6   : > { %1893 = vsyncadd (%p2327_p8), %s318_s20, 4294965760  ;;  %s326_s0 = sand.u32 1, %s2001_s25   ;;  %s2190_s19 = scalar_lea.vmem [#allocation6], %s1597_s14 }
  0xa7   : > { %s327_s11 = scalar_lea.sflag [#allocation7], %s326_s0 }
  0xa8   : > { %1895 = dma.done.wait (%p2327_p8), %s327_s11, 1536  }
  0xa9   : > { %1897 = vsyncadd (%p2327_p8), %s327_s11, 4294965760  ;;  %p2328_p5 = scmp.eq.s32.totalorder %s2001_s25, 0 }
  0xab   : > { %1899 = dma.done.wait (%p2328_p5), [#allocation7], 12288   ;;  %p2329_p4 = pmov %p2328_p5 }
  0xad   : > { %1901 = vsyncadd (%p2329_p4), [#allocation7], 4294955008  ;;  %p2330_p6 = pmov %p2329_p4 }
  0xae   : > { %p2331_p12 = pmov %p2329_p4 }
  0xaf   : > { %1903 = dma.done.wait (%p2330_p6), [#allocation10], 12416  }
  0xb0   : > { %1905 = vsyncadd (%p2331_p12), [#allocation10], 4294954880  ;;  %p2332_p13 = pmov %p2329_p4 }
  0xb1   : > { %p2333_p2 = pmov %p2329_p4 }
  0xb2   : > { %1907 = dma.done.wait (%p2332_p13), [#allocation5], 16  }
  0xb3   : > { %1909 = vsyncadd (%p2333_p2), [#allocation5], 4294967280 }
  0xb4   : > { %351 = sfence }
  0xb5   : > { %v430_v0 = vld [vmem:[#allocation8 + $0xf8] sm:$0xff]  ;;  %v429_v4 = vld [vmem:[#allocation8 + $0xf0] sm:$0xff]  ;;  %v428_v8 = vld [vmem:[#allocation8 + $0xe8] sm:$0xff]  ;;  %s1340_s8 = sld [smem:[#allocation12 + $0x1]]  ;;  %s1339_s28 = sshll.u32 %s2179_s15, 5 }
  0xb6   : > { %v462_v1 = vld [vmem:[#allocation8 + $0x1f8] sm:$0xff]  ;;  %1365 = vmatprep.subr.mxu0 %v430_v0  ;;  %v461_v5 = vld [vmem:[#allocation8 + $0x1f0] sm:$0xff]  ;;  %v460_v9 = vld [vmem:[#allocation8 + $0x1e8] sm:$0xff]  ;;  %s597_s17 = sld [smem:[#allocation12]]  ;;  %s380_s18 = scalar_lea.vmem [#allocation13], %s1339_s28 }
  0xb7   : > { %v414_v2 = vld [vmem:[#allocation8 + $0x78] sm:$0xff]  ;;  %1403 = vmatprep.subr.mxu1 %v462_v1  ;;  %v413_v6 = vld [vmem:[#allocation8 + $0x70] sm:$0xff]  ;;  %v412_v10 = vld [vmem:[#allocation8 + $0x68] sm:$0xff]  ;;  %s1156_s29 = scalar_lea.sflag [#allocation4], %s2179_s15  ;;  %p2334_p0 = scmp.ne.s32.totalorder %s2318_s9, 0 }
  0xb8   : > { %v446_v3 = vld [vmem:[#allocation8 + $0x178] sm:$0xff]  ;;  %1366 = vmatpush3.msra.mxu0 %v414_v2  ;;  %v445_v7 = vld [vmem:[#allocation8 + $0x170] sm:$0xff]  ;;  %v444_v11 = vld [vmem:[#allocation8 + $0x168] sm:$0xff]  ;;  %s1352_s13 = sshll.u32 (%p2334_p0), %s2001_s25, 1 }
  0xb9   : > { %1404 = vmatpush3.msra.mxu1 %v446_v3  ;;  %1367 = vmatprep.subr.mxu0 %v429_v4  ;;  %v427_v12 = vld [vmem:[#allocation8 + $0xe0] sm:$0xff]  ;;  %v426_v16 = vld [vmem:[#allocation8 + $0xd8] sm:$0xff]  ;;  %v425_v20 = vld [vmem:[#allocation8 + $0xd0] sm:$0xff]  ;;  %s1164_s7 = ssub.s32 (%p2334_p0), 3, %s1352_s13 }
  0xba   : > { %1405 = vmatprep.subr.mxu1 %v461_v5  ;;  %1368 = vmatpush3.msra.mxu0 %v413_v6  ;;  %v459_v13 = vld [vmem:[#allocation8 + $0x1e0] sm:$0xff]  ;;  %v458_v17 = vld [vmem:[#allocation8 + $0x1d8] sm:$0xff]  ;;  %v457_v21 = vld [vmem:[#allocation8 + $0x1d0] sm:$0xff]  ;;  %p1165_p10 = scmp.lt.s32.totalorder (%p2334_p0), %s1164_s7, 2 }
  0xbb   : > { %1406 = vmatpush3.msra.mxu1 %v445_v7  ;;  %1369 = vmatprep.subr.mxu0 %v428_v8  ;;  %v411_v14 = vld [vmem:[#allocation8 + $0x60] sm:$0xff]  ;;  %v410_v18 = vld [vmem:[#allocation8 + $0x58] sm:$0xff]  ;;  %v409_v22 = vld [vmem:[#allocation8 + $0x50] sm:$0xff] }
  0xbc   : > { %1407 = vmatprep.subr.mxu1 %v460_v9  ;;  %v443_v15 = vld [vmem:[#allocation8 + $0x160] sm:$0xff]  ;;  %1370 = vmatpush3.msra.mxu0 %v412_v10  ;;  %v442_v19 = vld [vmem:[#allocation8 + $0x158] sm:$0xff]  ;;  %v441_v23 = vld [vmem:[#allocation8 + $0x150] sm:$0xff] }
  0xbd   : > { %1408 = vmatpush3.msra.mxu1 %v444_v11  ;;  %1371 = vmatprep.subr.mxu0 %v427_v12  ;;  %v424_v24 = vld [vmem:[#allocation8 + $0xc8] sm:$0xff]  ;;  %v423_v28 = vld [vmem:[#allocation8 + $0xc0] sm:$0xff]  ;;  %v422_v32 = vld [vmem:[#allocation8 + $0xb8] sm:$0xff] }
  0xbe   : > { %1409 = vmatprep.subr.mxu1 %v459_v13  ;;  %1372 = vmatpush3.msra.mxu0 %v411_v14  ;;  %v456_v25 = vld [vmem:[#allocation8 + $0x1c8] sm:$0xff]  ;;  %v455_v29 = vld [vmem:[#allocation8 + $0x1c0] sm:$0xff]  ;;  %v454_v33 = vld [vmem:[#allocation8 + $0x1b8] sm:$0xff] }
  0xbf   : > { %1410 = vmatpush3.msra.mxu1 %v443_v15  ;;  %1373 = vmatprep.subr.mxu0 %v426_v16  ;;  %v408_v26 = vld [vmem:[#allocation8 + $0x48] sm:$0xff]  ;;  %v407_v30 = vld [vmem:[#allocation8 + $0x40] sm:$0xff]  ;;  %v406_v34 = vld [vmem:[#allocation8 + $0x38] sm:$0xff] }
  0xc0   : > { %1411 = vmatprep.subr.mxu1 %v458_v17  ;;  %1374 = vmatpush3.msra.mxu0 %v410_v18  ;;  %v440_v27 = vld [vmem:[#allocation8 + $0x148] sm:$0xff]  ;;  %v439_v31 = vld [vmem:[#allocation8 + $0x140] sm:$0xff]  ;;  %v438_v35 = vld [vmem:[#allocation8 + $0x138] sm:$0xff] }
  0xc1   : > { %1412 = vmatpush3.msra.mxu1 %v442_v19  ;;  %1375 = vmatprep.subr.mxu0 %v425_v20  ;;  %v421_v36 = vld [vmem:[#allocation8 + $0xb0] sm:$0xff]  ;;  %v420_v40 = vld [vmem:[#allocation8 + $0xa8] sm:$0xff]  ;;  %v419_v44 = vld [vmem:[#allocation8 + $0xa0] sm:$0xff] }
  0xc2   : > { %1413 = vmatprep.subr.mxu1 %v457_v21  ;;  %1376 = vmatpush3.msra.mxu0 %v409_v22  ;;  %v453_v37 = vld [vmem:[#allocation8 + $0x1b0] sm:$0xff]  ;;  %v452_v41 = vld [vmem:[#allocation8 + $0x1a8] sm:$0xff]  ;;  %v451_v45 = vld [vmem:[#allocation8 + $0x1a0] sm:$0xff] }
  0xc3   : > { %1414 = vmatpush3.msra.mxu1 %v441_v23  ;;  %1377 = vmatprep.subr.mxu0 %v424_v24  ;;  %v405_v38 = vld [vmem:[#allocation8 + $0x30] sm:$0xff]  ;;  %v404_v42 = vld [vmem:[#allocation8 + $0x28] sm:$0xff]  ;;  %v403_v46 = vld [vmem:[#allocation8 + $0x20] sm:$0xff] }
  0xc4   : > { %1415 = vmatprep.subr.mxu1 %v456_v25  ;;  %1378 = vmatpush3.msra.mxu0 %v408_v26  ;;  %v437_v39 = vld [vmem:[#allocation8 + $0x130] sm:$0xff]  ;;  %v436_v43 = vld [vmem:[#allocation8 + $0x128] sm:$0xff]  ;;  %v435_v47 = vld [vmem:[#allocation8 + $0x120] sm:$0xff] }
  0xc5   : > { %1416 = vmatpush3.msra.mxu1 %v440_v27  ;;  %1379 = vmatprep.subr.mxu0 %v423_v28  ;;  %v418_v48 = vld [vmem:[#allocation8 + $0x98] sm:$0xff]  ;;  %v417_v52 = vld [vmem:[#allocation8 + $0x90] sm:$0xff]  ;;  %v416_v56 = vld [vmem:[#allocation8 + $0x88] sm:$0xff] }
  0xc6   : > { %1417 = vmatprep.subr.mxu1 %v455_v29  ;;  %1380 = vmatpush3.msra.mxu0 %v407_v30  ;;  %v450_v49 = vld [vmem:[#allocation8 + $0x198] sm:$0xff]  ;;  %v449_v53 = vld [vmem:[#allocation8 + $0x190] sm:$0xff]  ;;  %v448_v57 = vld [vmem:[#allocation8 + $0x188] sm:$0xff] }
  0xc7   : > { %1418 = vmatpush3.msra.mxu1 %v439_v31  ;;  %1381 = vmatprep.subr.mxu0 %v422_v32  ;;  %v402_v50 = vld [vmem:[#allocation8 + $0x18] sm:$0xff]  ;;  %v401_v54 = vld [vmem:[#allocation8 + $0x10] sm:$0xff]  ;;  %v400_v58 = vld [vmem:[#allocation8 + $0x8] sm:$0xff] }
  0xc8   : > { %1419 = vmatprep.subr.mxu1 %v454_v33  ;;  %1382 = vmatpush3.msra.mxu0 %v406_v34  ;;  %v434_v51 = vld [vmem:[#allocation8 + $0x118] sm:$0xff]  ;;  %v433_v55 = vld [vmem:[#allocation8 + $0x110] sm:$0xff]  ;;  %v432_v59 = vld [vmem:[#allocation8 + $0x108] sm:$0xff] }
  0xc9   : > { %1420 = vmatpush3.msra.mxu1 %v438_v35  ;;  %1383 = vmatprep.subr.mxu0 %v421_v36  ;;  %v415_v60 = vld [vmem:[#allocation8 + $0x80] sm:$0xff]  ;;  %v600_v63 = vld [vmem:[%s2183_s26 + $0x8] sm:$0xff]  ;;  %v602_v2 = vld [vmem:[%s2183_s26 + $0x18] sm:$0xff] }
  0xca   : > { %1421 = vmatprep.subr.mxu1 %v453_v37  ;;  %1384 = vmatpush3.msra.mxu0 %v405_v38  ;;  %v447_v61 = vld [vmem:[#allocation8 + $0x180] sm:$0xff]  ;;  %v494_v3 = vld [vmem:[#allocation8 + $0x2f8] sm:$0xff]  ;;  %v601_v5 = vld [vmem:[%s2183_s26 + $0x10] sm:$0xff] }
  0xcb   : > { %1422 = vmatpush3.msra.mxu1 %v437_v39  ;;  %1385 = vmatprep.subr.mxu0 %v420_v40  ;;  %v399_v62 = vld [vmem:[#allocation8] sm:$0xff]  ;;  %v526_v4 = vld [vmem:[#allocation9 + $0xf8] sm:$0xff]  ;;  %v493_v8 = vld [vmem:[#allocation8 + $0x2f0] sm:$0xff] }
  0xcc   : > { %1423 = vmatprep.subr.mxu1 %v452_v41  ;;  %1386 = vmatpush3.msra.mxu0 %v404_v42  ;;  %v431_v0 = vld [vmem:[#allocation8 + $0x100] sm:$0xff]  ;;  %v478_v6 = vld [vmem:[#allocation8 + $0x278] sm:$0xff]  ;;  %v525_v9 = vld [vmem:[#allocation9 + $0xf0] sm:$0xff] }
  0xcd   : > { %1424 = vmatpush3.msra.mxu1 %v436_v43  ;;  %1387 = vmatprep.subr.mxu0 %v419_v44  ;;  %v599_v1 = vld [vmem:[%s2183_s26] sm:$0xff]  ;;  %v510_v7 = vld [vmem:[#allocation9 + $0x78] sm:$0xff]  ;;  %v477_v10 = vld [vmem:[#allocation8 + $0x270] sm:$0xff] }
  0xce   : > { %1425 = vmatprep.subr.mxu1 %v451_v45  ;;  %1388 = vmatpush3.msra.mxu0 %v403_v46  ;;  %v509_v11 = vld [vmem:[#allocation9 + $0x70] sm:$0xff]  ;;  %v492_v12 = vld [vmem:[#allocation8 + $0x2e8] sm:$0xff]  ;;  %v491_v16 = vld [vmem:[#allocation8 + $0x2e0] sm:$0xff] }
  0xcf   : > { %1426 = vmatpush3.msra.mxu1 %v435_v47  ;;  %1389 = vmatprep.subr.mxu0 %v418_v48  ;;  %v524_v13 = vld [vmem:[#allocation9 + $0xe8] sm:$0xff]  ;;  %v523_v17 = vld [vmem:[#allocation9 + $0xe0] sm:$0xff]  ;;  %v490_v20 = vld [vmem:[#allocation8 + $0x2d8] sm:$0xff] }
  0xd0   : > { %1427 = vmatprep.subr.mxu1 %v450_v49  ;;  %1390 = vmatpush3.msra.mxu0 %v402_v50  ;;  %v476_v14 = vld [vmem:[#allocation8 + $0x268] sm:$0xff]  ;;  %v475_v18 = vld [vmem:[#allocation8 + $0x260] sm:$0xff]  ;;  %v522_v21 = vld [vmem:[#allocation9 + $0xd8] sm:$0xff] }
  0xd1   : > { %1428 = vmatpush3.msra.mxu1 %v434_v51  ;;  %1391 = vmatprep.subr.mxu0 %v417_v52  ;;  %v508_v15 = vld [vmem:[#allocation9 + $0x68] sm:$0xff]  ;;  %v507_v19 = vld [vmem:[#allocation9 + $0x60] sm:$0xff]  ;;  %v474_v22 = vld [vmem:[#allocation8 + $0x258] sm:$0xff] }
  0xd2   : > { %1429 = vmatprep.subr.mxu1 %v449_v53  ;;  %1392 = vmatpush3.msra.mxu0 %v401_v54  ;;  %v506_v23 = vld [vmem:[#allocation9 + $0x58] sm:$0xff]  ;;  %v489_v24 = vld [vmem:[#allocation8 + $0x2d0] sm:$0xff]  ;;  %v488_v28 = vld [vmem:[#allocation8 + $0x2c8] sm:$0xff] }
  0xd3   : > { %1430 = vmatpush3.msra.mxu1 %v433_v55  ;;  %1393 = vmatprep.subr.mxu0 %v416_v56  ;;  %v521_v25 = vld [vmem:[#allocation9 + $0xd0] sm:$0xff]  ;;  %v520_v29 = vld [vmem:[#allocation9 + $0xc8] sm:$0xff]  ;;  %v487_v32 = vld [vmem:[#allocation8 + $0x2c0] sm:$0xff] }
  0xd4   : > { %1431 = vmatprep.subr.mxu1 %v448_v57  ;;  %1394 = vmatpush3.msra.mxu0 %v400_v58  ;;  %v473_v26 = vld [vmem:[#allocation8 + $0x250] sm:$0xff]  ;;  %v472_v30 = vld [vmem:[#allocation8 + $0x248] sm:$0xff]  ;;  %v519_v33 = vld [vmem:[#allocation9 + $0xc0] sm:$0xff] }
  0xd5   : > { %1432 = vmatpush3.msra.mxu1 %v432_v59  ;;  %1395 = vmatprep.subr.mxu0 %v415_v60  ;;  %v505_v27 = vld [vmem:[#allocation9 + $0x50] sm:$0xff]  ;;  %v504_v31 = vld [vmem:[#allocation9 + $0x48] sm:$0xff]  ;;  %v471_v34 = vld [vmem:[#allocation8 + $0x240] sm:$0xff] }
  0xd6   : > { %1433 = vmatprep.subr.mxu1 %v447_v61  ;;  %1396 = vmatpush3.msra.mxu0 %v399_v62  ;;  %v503_v35 = vld [vmem:[#allocation9 + $0x40] sm:$0xff]  ;;  %v486_v36 = vld [vmem:[#allocation8 + $0x2b8] sm:$0xff]  ;;  %v485_v40 = vld [vmem:[#allocation8 + $0x2b0] sm:$0xff] }
  0xd7   : > { %679 = vmatprep.mubr.f32.mxu0 %v600_v63  ;;  %1434 = vmatpush3.msra.mxu1 %v431_v0  ;;  %v518_v37 = vld [vmem:[#allocation9 + $0xb8] sm:$0xff]  ;;  %v517_v41 = vld [vmem:[#allocation9 + $0xb0] sm:$0xff]  ;;  %v484_v44 = vld [vmem:[#allocation8 + $0x2a8] sm:$0xff] }
  0xd8   : > { %680 = vmatmul.mubr.f32.vlgmr.msra.gmra.mxu0 %v599_v1  ;;  %754 = vmatprep.mubr.f32.mxu1 %v602_v2  ;;  %v470_v38 = vld [vmem:[#allocation8 + $0x238] sm:$0xff]  ;;  %v469_v42 = vld [vmem:[#allocation8 + $0x230] sm:$0xff]  ;;  %v516_v45 = vld [vmem:[#allocation9 + $0xa8] sm:$0xff] }
  0xd9   : > { %1441 = vmatprep.subr.mxu0 %v494_v3  ;;  %1479 = vmatprep.subr.mxu1 %v526_v4  ;;  %v502_v39 = vld [vmem:[#allocation9 + $0x38] sm:$0xff]  ;;  %v501_v43 = vld [vmem:[#allocation9 + $0x30] sm:$0xff]  ;;  %v468_v46 = vld [vmem:[#allocation8 + $0x228] sm:$0xff] }
  0xda   : > { %755 = vmatmul.mubr.f32.vlgmr.msra.gmra.mxu1 %v601_v5  ;;  %1442 = vmatpush3.msra.mxu0 %v478_v6  ;;  %v500_v47 = vld [vmem:[#allocation9 + $0x28] sm:$0xff]  ;;  %v483_v48 = vld [vmem:[#allocation8 + $0x2a0] sm:$0xff]  ;;  %v482_v52 = vld [vmem:[#allocation8 + $0x298] sm:$0xff] }
  0xdb   : > { %1480 = vmatpush3.msra.mxu1 %v510_v7  ;;  %1443 = vmatprep.subr.mxu0 %v493_v8  ;;  %v515_v49 = vld [vmem:[#allocation9 + $0xa0] sm:$0xff]  ;;  %v514_v53 = vld [vmem:[#allocation9 + $0x98] sm:$0xff]  ;;  %v481_v57 = vld [vmem:[#allocation8 + $0x290] sm:$0xff] }
  0xdc   : > { %1481 = vmatprep.subr.mxu1 %v525_v9  ;;  %1444 = vmatpush3.msra.mxu0 %v477_v10  ;;  %v467_v50 = vld [vmem:[#allocation8 + $0x220] sm:$0xff]  ;;  %v466_v54 = vld [vmem:[#allocation8 + $0x218] sm:$0xff]  ;;  %v513_v58 = vld [vmem:[#allocation9 + $0x90] sm:$0xff] }
  0xdd   : > { %1482 = vmatpush3.msra.mxu1 %v509_v11  ;;  %1445 = vmatprep.subr.mxu0 %v492_v12  ;;  %v499_v51 = vld [vmem:[#allocation9 + $0x20] sm:$0xff]  ;;  %v498_v55 = vld [vmem:[#allocation9 + $0x18] sm:$0xff]  ;;  %v605_v59 = vld [vmem:[%s2183_s26 + $0x30] sm:$0xff] }
  0xde   : > { %1483 = vmatprep.subr.mxu1 %v524_v13  ;;  %1446 = vmatpush3.msra.mxu0 %v476_v14  ;;  %v606_v56 = vld [vmem:[%s2183_s26 + $0x38] sm:$0xff]  ;;  %v465_v60 = vld [vmem:[#allocation8 + $0x210] sm:$0xff]  ;;  %v608_v62 = vld [vmem:[%s2183_s26 + $0x48] sm:$0xff] }
  0xdf   : > { %1484 = vmatpush3.msra.mxu1 %v508_v15  ;;  %1447 = vmatprep.subr.mxu0 %v491_v16  ;;  %v497_v61 = vld [vmem:[#allocation9 + $0x10] sm:$0xff]  ;;  %v480_v63 = vld [vmem:[#allocation8 + $0x288] sm:$0xff]  ;;  %v607_v1 = vld [vmem:[%s2183_s26 + $0x40] sm:$0xff] }
  0xe0   : > { %1485 = vmatprep.subr.mxu1 %v523_v17  ;;  %1448 = vmatpush3.msra.mxu0 %v475_v18  ;;  %v512_v0 = vld [vmem:[#allocation9 + $0x88] sm:$0xff]  ;;  %v479_v4 = vld [vmem:[#allocation8 + $0x280] sm:$0xff]  ;;  %v558_v11 = vld [vmem:[#allocation9 + $0x1f8] sm:$0xff] }
  0xe1   : > { %1486 = vmatpush3.msra.mxu1 %v507_v19  ;;  %1449 = vmatprep.subr.mxu0 %v490_v20  ;;  %v464_v2 = vld [vmem:[#allocation8 + $0x208] sm:$0xff]  ;;  %v511_v5 = vld [vmem:[#allocation9 + $0x80] sm:$0xff]  ;;  %v590_v12 = vld [vmem:[#allocation9 + $0x2f8] sm:$0xff] }
  0xe2   : > { %1487 = vmatprep.subr.mxu1 %v522_v21  ;;  %1450 = vmatpush3.msra.mxu0 %v474_v22  ;;  %v496_v3 = vld [vmem:[#allocation9 + $0x8] sm:$0xff]  ;;  %v463_v6 = vld [vmem:[#allocation8 + $0x200] sm:$0xff]  ;;  %v542_v14 = vld [vmem:[#allocation9 + $0x178] sm:$0xff] }
  0xe3   : > { %1488 = vmatpush3.msra.mxu1 %v506_v23  ;;  %1451 = vmatprep.subr.mxu0 %v489_v24  ;;  %v604_v7 = vld [vmem:[%s2183_s26 + $0x28] sm:$0xff]  ;;  %v495_v8 = vld [vmem:[#allocation9] sm:$0xff]  ;;  %v574_v15 = vld [vmem:[#allocation9 + $0x278] sm:$0xff] }
  0xe4   : > { %1489 = vmatprep.subr.mxu1 %v521_v25  ;;  %1452 = vmatpush3.msra.mxu0 %v473_v26  ;;  %v603_v9 = vld [vmem:[%s2183_s26 + $0x20] sm:$0xff]  ;;  %v841_v10 = vld [vmem:[%s2190_s19 + $0x8] sm:$0xff]  ;;  %v557_v16 = vld [vmem:[#allocation9 + $0x1f0] sm:$0xff] }
  0xe5   : > { %1490 = vmatpush3.msra.mxu1 %v505_v27  ;;  %1453 = vmatprep.subr.mxu0 %v488_v28  ;;  %v840_v13 = vld [vmem:[%s2190_s19] sm:$0xff]  ;;  %v589_v17 = vld [vmem:[#allocation9 + $0x2f0] sm:$0xff]  ;;  %v610_v18 = vld [vmem:[%s2183_s26 + $0x58] sm:$0xff] }
  0xe6   : > { %1491 = vmatprep.subr.mxu1 %v520_v29  ;;  %1454 = vmatpush3.msra.mxu0 %v472_v30  ;;  %v541_v19 = vld [vmem:[#allocation9 + $0x170] sm:$0xff]  ;;  %v556_v22 = vld [vmem:[#allocation9 + $0x1e8] sm:$0xff]  ;;  %v555_v26 = vld [vmem:[#allocation9 + $0x1e0] sm:$0xff] }
  0xe7   : > { %1492 = vmatpush3.msra.mxu1 %v504_v31  ;;  %1455 = vmatprep.subr.mxu0 %v487_v32  ;;  %v573_v20 = vld [vmem:[#allocation9 + $0x270] sm:$0xff]  ;;  %v588_v23 = vld [vmem:[#allocation9 + $0x2e8] sm:$0xff]  ;;  %v587_v27 = vld [vmem:[#allocation9 + $0x2e0] sm:$0xff] }
  0xe8   : > { %1493 = vmatprep.subr.mxu1 %v519_v33  ;;  %1456 = vmatpush3.msra.mxu0 %v471_v34  ;;  %v609_v21 = vld [vmem:[%s2183_s26 + $0x50] sm:$0xff]  ;;  %v540_v24 = vld [vmem:[#allocation9 + $0x168] sm:$0xff]  ;;  %v539_v28 = vld [vmem:[#allocation9 + $0x160] sm:$0xff] }
  0xe9   : > { %1494 = vmatpush3.msra.mxu1 %v503_v35  ;;  %1457 = vmatprep.subr.mxu0 %v486_v36  ;;  %v572_v25 = vld [vmem:[#allocation9 + $0x268] sm:$0xff]  ;;  %v571_v29 = vld [vmem:[#allocation9 + $0x260] sm:$0xff]  ;;  %v554_v30 = vld [vmem:[#allocation9 + $0x1d8] sm:$0xff] }
  0xea   : > { %1495 = vmatprep.subr.mxu1 %v518_v37  ;;  %1458 = vmatpush3.msra.mxu0 %v470_v38  ;;  %v586_v31 = vld [vmem:[#allocation9 + $0x2d8] sm:$0xff]  ;;  %v553_v34 = vld [vmem:[#allocation9 + $0x1d0] sm:$0xff]  ;;  %v552_v38 = vld [vmem:[#allocation9 + $0x1c8] sm:$0xff] }
  0xeb   : > { %1496 = vmatpush3.msra.mxu1 %v502_v39  ;;  %1459 = vmatprep.subr.mxu0 %v485_v40  ;;  %v538_v32 = vld [vmem:[#allocation9 + $0x158] sm:$0xff]  ;;  %v585_v35 = vld [vmem:[#allocation9 + $0x2d0] sm:$0xff]  ;;  %v584_v39 = vld [vmem:[#allocation9 + $0x2c8] sm:$0xff] }
  0xec   : > { %1497 = vmatprep.subr.mxu1 %v517_v41  ;;  %1460 = vmatpush3.msra.mxu0 %v469_v42  ;;  %v570_v33 = vld [vmem:[#allocation9 + $0x258] sm:$0xff]  ;;  %v537_v36 = vld [vmem:[#allocation9 + $0x150] sm:$0xff]  ;;  %v536_v40 = vld [vmem:[#allocation9 + $0x148] sm:$0xff] }
  0xed   : > { %1498 = vmatpush3.msra.mxu1 %v501_v43  ;;  %1461 = vmatprep.subr.mxu0 %v484_v44  ;;  %v569_v37 = vld [vmem:[#allocation9 + $0x250] sm:$0xff]  ;;  %v568_v41 = vld [vmem:[#allocation9 + $0x248] sm:$0xff]  ;;  %v551_v42 = vld [vmem:[#allocation9 + $0x1c0] sm:$0xff] }
  0xee   : > { %1499 = vmatprep.subr.mxu1 %v516_v45  ;;  %1462 = vmatpush3.msra.mxu0 %v468_v46  ;;  %v583_v43 = vld [vmem:[#allocation9 + $0x2c0] sm:$0xff]  ;;  %v550_v46 = vld [vmem:[#allocation9 + $0x1b8] sm:$0xff] }
  0xef   : > { %1500 = vmatpush3.msra.mxu1 %v500_v47  ;;  %1463 = vmatprep.subr.mxu0 %v483_v48  ;;  %v535_v44 = vld [vmem:[#allocation9 + $0x140] sm:$0xff]  ;;  %v582_v47 = vld [vmem:[#allocation9 + $0x2b8] sm:$0xff] }
  0xf0   : > { %1501 = vmatprep.subr.mxu1 %v515_v49  ;;  %1464 = vmatpush3.msra.mxu0 %v467_v50  ;;  %v567_v45 = vld [vmem:[#allocation9 + $0x240] sm:$0xff]  ;;  %v534_v48 = vld [vmem:[#allocation9 + $0x138] sm:$0xff]  ;;  %v549_v50 = vld [vmem:[#allocation9 + $0x1b0] sm:$0xff] }
  0xf1   : > { %1502 = vmatpush3.msra.mxu1 %v499_v51  ;;  %1465 = vmatprep.subr.mxu0 %v482_v52  ;;  %v566_v49 = vld [vmem:[#allocation9 + $0x238] sm:$0xff]  ;;  %v581_v51 = vld [vmem:[#allocation9 + $0x2b0] sm:$0xff] }
  0xf2   : > { %1503 = vmatprep.subr.mxu1 %v514_v53  ;;  %1466 = vmatpush3.msra.mxu0 %v466_v54  ;;  %v533_v52 = vld [vmem:[#allocation9 + $0x130] sm:$0xff]  ;;  %v548_v54 = vld [vmem:[#allocation9 + $0x1a8] sm:$0xff] }
  0xf3   : > { %1504 = vmatpush3.msra.mxu1 %v498_v55  ;;  %684 = vmatprep.mubr.f32.mxu0 %v606_v56  ;;  %v565_v53 = vld [vmem:[#allocation9 + $0x230] sm:$0xff]  ;;  %v580_v55 = vld [vmem:[#allocation9 + $0x2a8] sm:$0xff] }
  0xf4   : > { %1467 = vmatprep.subr.mxu0 %v481_v57  ;;  %1505 = vmatprep.subr.mxu1 %v513_v58  ;;  %v532_v56 = vld [vmem:[#allocation9 + $0x128] sm:$0xff]  ;;  %v547_v58 = vld [vmem:[#allocation9 + $0x1a0] sm:$0xff] }
  0xf5   : > { %685 = vmatmul.mubr.f32.gmra.mxu0 %v605_v59  ;;  %1506 = vmatpush3.msra.mxu1 %v497_v61  ;;  %v564_v57 = vld [vmem:[#allocation9 + $0x228] sm:$0xff]  ;;  %v579_v59 = vld [vmem:[#allocation9 + $0x2a0] sm:$0xff] }
  0xf6   : > { %1468 = vmatpush3.msra.mxu0 %v465_v60  ;;  %759 = vmatprep.mubr.f32.mxu1 %v608_v62  ;;  %v531_v60 = vld [vmem:[#allocation9 + $0x120] sm:$0xff]  ;;  %v546_v62 = vld [vmem:[#allocation9 + $0x198] sm:$0xff] }
  0xf7   : > { %1469 = vmatprep.subr.mxu0 %v480_v63  ;;  %1507 = vmatprep.subr.mxu1 %v512_v0  ;;  %v563_v61 = vld [vmem:[#allocation9 + $0x220] sm:$0xff]  ;;  %v578_v63 = vld [vmem:[#allocation9 + $0x298] sm:$0xff] }
  0xf8   : > { %760 = vmatmul.mubr.f32.gmra.mxu1 %v607_v1  ;;  %1470 = vmatpush3.msra.mxu0 %v464_v2  ;;  %v530_v0 = vld [vmem:[#allocation9 + $0x118] sm:$0xff]  ;;  %v545_v2 = vld [vmem:[#allocation9 + $0x190] sm:$0xff] }
  0xf9   : > { %1508 = vmatpush3.msra.mxu1 %v496_v3  ;;  %1471 = vmatprep.subr.mxu0 %v479_v4  ;;  %v562_v1 = vld [vmem:[#allocation9 + $0x218] sm:$0xff]  ;;  %v577_v3 = vld [vmem:[#allocation9 + $0x290] sm:$0xff] }
  0xfa   : > { %1509 = vmatprep.subr.mxu1 %v511_v5  ;;  %1472 = vmatpush3.msra.mxu0 %v463_v6  ;;  %v847_v4 = vld [vmem:[%s2190_s19 + $0x38] sm:$0xff]  ;;  %v529_v5 = vld [vmem:[#allocation9 + $0x110] sm:$0xff] }
  0xfb   : > { %829 = vmatprep.mubr.f32.mxu0 %v604_v7  ;;  %1510 = vmatpush3.msra.mxu1 %v495_v8  ;;  %v561_v6 = vld [vmem:[#allocation9 + $0x210] sm:$0xff]  ;;  %v544_v7 = vld [vmem:[#allocation9 + $0x188] sm:$0xff] }
  0xfc   : > { %830 = vmatmul.mubr.f32.vlgmr.msra.gmra.mxu0 %v603_v9  ;;  %920 = vmatprep.mubr.f32.mxu1 %v841_v10  ;;  %v846_v8 = vld [vmem:[%s2190_s19 + $0x30] sm:$0xff]  ;;  %v576_v9 = vld [vmem:[#allocation9 + $0x288] sm:$0xff] }
  0xfd   : > { %1517 = vmatprep.subr.mxu0 %v558_v11  ;;  %1555 = vmatprep.subr.mxu1 %v590_v12  ;;  %v528_v10 = vld [vmem:[#allocation9 + $0x108] sm:$0xff]  ;;  %v543_v12 = vld [vmem:[#allocation9 + $0x180] sm:$0xff] }
  0xfe   : > { %921 = vmatmul.mubr.f32.vlgmr.msra.gmra.mxu1 %v840_v13  ;;  %1518 = vmatpush3.msra.mxu0 %v542_v14  ;;  %v560_v11 = vld [vmem:[#allocation9 + $0x208] sm:$0xff]  ;;  %v575_v13 = vld [vmem:[#allocation9 + $0x280] sm:$0xff] }
  0xff   : > { %1556 = vmatpush3.msra.mxu1 %v574_v15  ;;  %1519 = vmatprep.subr.mxu0 %v557_v16  ;;  %v527_v14 = vld [vmem:[#allocation9 + $0x100] sm:$0xff]  ;;  %v843_v15 = vld [vmem:[%s2190_s19 + $0x18] sm:$0xff] }
 0x100   : > { %1557 = vmatprep.subr.mxu1 %v589_v17  ;;  %834 = vmatprep.mubr.f32.mxu0 %v610_v18  ;;  %v559_v16 = vld [vmem:[#allocation9 + $0x200] sm:$0xff]  ;;  %v845_v17 = vld [vmem:[%s2190_s19 + $0x28] sm:$0xff]  ;;  %v842_v18 = vld [vmem:[%s2190_s19 + $0x10] sm:$0xff] }
 0x101   : > { %1520 = vmatpush3.msra.mxu0 %v541_v19  ;;  %1558 = vmatpush3.msra.mxu1 %v573_v20  ;;  %v844_v19 = vld [vmem:[%s2190_s19 + $0x20] sm:$0xff]  ;;  %v849_v20 = vld [vmem:[%s2190_s19 + $0x48] sm:$0xff] }
 0x102   : > { %835 = vmatmul.mubr.f32.gmra.mxu0 %v609_v21  ;;  %1521 = vmatprep.subr.mxu0 %v556_v22  ;;  %v851_v21 = vld [vmem:[%s2190_s19 + $0x58] sm:$0xff]  ;;  %v848_v22 = vld [vmem:[%s2190_s19 + $0x40] sm:$0xff] }
 0x103   : > { %1559 = vmatprep.subr.mxu1 %v588_v23  ;;  %1522 = vmatpush3.msra.mxu0 %v540_v24  ;;  %v850_v23 = vld [vmem:[%s2190_s19 + $0x50] sm:$0xff] }
 0x104   : > { %1560 = vmatpush3.msra.mxu1 %v572_v25  ;;  %1523 = vmatprep.subr.mxu0 %v555_v26 }
 0x105   : > { %1561 = vmatprep.subr.mxu1 %v587_v27  ;;  %1524 = vmatpush3.msra.mxu0 %v539_v28 }
 0x106   : > { %1562 = vmatpush3.msra.mxu1 %v571_v29  ;;  %1525 = vmatprep.subr.mxu0 %v554_v30 }
 0x107   : > { %1563 = vmatprep.subr.mxu1 %v586_v31  ;;  %1526 = vmatpush3.msra.mxu0 %v538_v32 }
 0x108   : > { %1564 = vmatpush3.msra.mxu1 %v570_v33  ;;  %1527 = vmatprep.subr.mxu0 %v553_v34 }
 0x109   : > { %1565 = vmatprep.subr.mxu1 %v585_v35  ;;  %1528 = vmatpush3.msra.mxu0 %v537_v36 }
 0x10a   : > { %1566 = vmatpush3.msra.mxu1 %v569_v37  ;;  %1529 = vmatprep.subr.mxu0 %v552_v38  ;;  %v1341_v38 = vld [vmem:[#allocation11] ss:$0 sm:$0xff] }
 0x10b   : > { %1567 = vmatprep.subr.mxu1 %v584_v39  ;;  %1530 = vmatpush3.msra.mxu0 %v536_v40 }
 0x10c   : > { %1568 = vmatpush3.msra.mxu1 %v568_v41  ;;  %1531 = vmatprep.subr.mxu0 %v551_v42 }
 0x10d   : > { %1569 = vmatprep.subr.mxu1 %v583_v43  ;;  %1532 = vmatpush3.msra.mxu0 %v535_v44 }
 0x10e   : > { %1570 = vmatpush3.msra.mxu1 %v567_v45  ;;  %1533 = vmatprep.subr.mxu0 %v550_v46 }
 0x10f   : > { %1571 = vmatprep.subr.mxu1 %v582_v47  ;;  %1534 = vmatpush3.msra.mxu0 %v534_v48  ;;  %v1342_v47 = vld [vmem:[#allocation11 + $0x1] ss:$0 sm:$0xff] }
 0x110   : > { %1572 = vmatpush3.msra.mxu1 %v566_v49  ;;  %1535 = vmatprep.subr.mxu0 %v549_v50 }
 0x111   : > { %1573 = vmatprep.subr.mxu1 %v581_v51  ;;  %1536 = vmatpush3.msra.mxu0 %v533_v52 }
 0x112   : > { %1574 = vmatpush3.msra.mxu1 %v565_v53  ;;  %1537 = vmatprep.subr.mxu0 %v548_v54 }
 0x113   : > { %1575 = vmatprep.subr.mxu1 %v580_v55  ;;  %1538 = vmatpush3.msra.mxu0 %v532_v56 }
 0x114   : > { %1576 = vmatpush3.msra.mxu1 %v564_v57  ;;  %1539 = vmatprep.subr.mxu0 %v547_v58 }
 0x115   : > { %1577 = vmatprep.subr.mxu1 %v579_v59  ;;  %1540 = vmatpush3.msra.mxu0 %v531_v60 }
 0x116   : > { %1578 = vmatpush3.msra.mxu1 %v563_v61  ;;  %1541 = vmatprep.subr.mxu0 %v546_v62 }
 0x117   : > { %1579 = vmatprep.subr.mxu1 %v578_v63  ;;  %1542 = vmatpush3.msra.mxu0 %v530_v0  ;;  %v1345_v0 = vld [vmem:[#allocation11 + $0x4] ss:$0 sm:$0xff] }
 0x118   : > { %1580 = vmatpush3.msra.mxu1 %v562_v1  ;;  %1543 = vmatprep.subr.mxu0 %v545_v2  ;;  %v1343_v1 = vld [vmem:[#allocation11 + $0x2] ss:$0 sm:$0xff] }
 0x119   : > { %1581 = vmatprep.subr.mxu1 %v577_v3  ;;  %925 = vmatprep.mubr.f32.mxu1 %v847_v4 }
 0x11a   : > { %1544 = vmatpush3.msra.mxu0 %v529_v5  ;;  %1582 = vmatpush3.msra.mxu1 %v561_v6  ;;  %v1346_v5 = vld [vmem:[#allocation11 + $0x5] ss:$0 sm:$0xff]  ;;  %v1344_v6 = vld [vmem:[#allocation11 + $0x3] ss:$0 sm:$0xff] }
 0x11b   : > { %1545 = vmatprep.subr.mxu0 %v544_v7  ;;  %926 = vmatmul.mubr.f32.gmra.mxu1 %v846_v8 }
 0x11c   : > { %1583 = vmatprep.subr.mxu1 %v576_v9  ;;  %1546 = vmatpush3.msra.mxu0 %v528_v10 }
 0x11d   : > { %1584 = vmatpush3.msra.mxu1 %v560_v11  ;;  %1547 = vmatprep.subr.mxu0 %v543_v12 }
 0x11e   : > { %1585 = vmatprep.subr.mxu1 %v575_v13  ;;  %1548 = vmatpush3.msra.mxu0 %v527_v14 }
 0x11f   : > { %995 = vmatprep.mubr.f32.mxu0 %v843_v15  ;;  %1586 = vmatpush3.msra.mxu1 %v559_v16 }
 0x120   : > { %1070 = vmatprep.mubr.f32.mxu1 %v845_v17  ;;  %996 = vmatmul.mubr.f32.vlgmr.msra.gmra.mxu0 %v842_v18 }
 0x121   : > { %1071 = vmatmul.mubr.f32.vlgmr.msra.gmra.mxu1 %v844_v19  ;;  %1000 = vmatprep.mubr.f32.mxu0 %v849_v20 }
 0x122   : > { %1075 = vmatprep.mubr.f32.mxu1 %v851_v21 }
 0x124   : > { %1001 = vmatmul.mubr.f32.gmra.mxu0 %v848_v22 }
 0x125   : > { %1076 = vmatmul.mubr.f32.gmra.mxu1 %v850_v23 }
 0x198   : > { %v1397_v24 = vpop.f32.mrf.mxu0 }
 0x19a   : > { %v1435_v25 = vpop.f32.mrf.mxu1  ;;  %v1398_v26 = vpop.f32.mrf.mxu0 }
 0x19b   : > { %v1399_v36 = vadd.f32 %v1398_v26, %v1397_v24  ;;  %v1120_v26 = vstv %s1340_s8 }
 0x19c   : > { %v1436_v28 = vpop.f32.mrf.mxu1 }
 0x19d   : > { %v682_v41 = vadd.f32 %v1399_v36, %v1341_v38  ;;  %v1437_v42 = vadd.f32 %v1436_v28, %v1435_v25 }
 0x19f   : > { %v757_v50 = vadd.f32 %v1437_v42, %v682_v41 }
 0x1b5   : > { %v1400_v27 = vpop.f32.mrf.mxu0 }
 0x1b7   : > { %v1401_v30 = vpop.f32.mrf.mxu0 }
 0x1b8   : > { %v1438_v29 = vpop.f32.mrf.mxu1  ;;  %v1402_v43 = vadd.f32 %v1401_v30, %v1400_v27  ;;  %v1099_v27 = vstv %s597_s17 }
 0x1ba   : > { %v1439_v31 = vpop.f32.mrf.mxu1  ;;  %v687_v51 = vadd.f32 %v1402_v43, %v1341_v38 }
 0x1bb   : > { %v1440_v52 = vadd.f32 %v1439_v31, %v1438_v29 }
 0x1bc   : > { %v1473_v32 = vpop.f32.mrf.mxu0 }
 0x1bd   : > { %v762_v2 = vadd.f32 %v1440_v52, %v687_v51 }
 0x1be   : > { %v1511_v33 = vpop.f32.mrf.mxu1  ;;  %v1474_v34 = vpop.f32.mrf.mxu0 }
 0x1bf   : > { %v1475_v46 = vadd.f32 %v1474_v34, %v1473_v32 }
 0x1c0   : > { %v1512_v35 = vpop.f32.mrf.mxu1 }
 0x1c1   : > { %v1513_v45 = vadd.f32 %v1512_v35, %v1511_v33  ;;  %v2232_v58 = vadd.f32 %v1475_v46, %v757_v50 }
 0x1c2   : > { %v1476_v37 = vpop.f32.mrf.mxu0 }
 0x1c3   : > { %v923_v55 = vadd.f32 %v1513_v45, %v1342_v47  ;;  %v1106_v11 = vmul.f32 %v1345_v0, %v2232_v58  ;;  %v1085_v12 = vmul.f32 %v1343_v1, %v2232_v58 }
 0x1c4   : > { %v1477_v44 = vpop.f32.mrf.mxu0 }
 0x1c5   : > { %v1478_v59 = vadd.f32 %v1477_v44, %v1476_v37 }
 0x1c7   : > { %v2234_v10 = vadd.f32 %v1478_v59, %v762_v2 }
 0x1c9   : > { %v1107_v20 = vmul.f32 %v1345_v0, %v2234_v10  ;;  %v1086_v22 = vmul.f32 %v1343_v1, %v2234_v10 }
 0x1db   : > { %v1514_v39 = vpop.f32.mrf.mxu1 }
 0x1dd   : > { %v1515_v40 = vpop.f32.mrf.mxu1 }
 0x1de   : > { %v1516_v56 = vadd.f32 %v1515_v40, %v1514_v39 }
 0x1e0   : > { %v1549_v48 = vpop.f32.mrf.mxu0  ;;  %v928_v7 = vadd.f32 %v1516_v56, %v1342_v47 }
 0x1e1   : > { %v1587_v49 = vpop.f32.mrf.mxu1 }
 0x1e2   : > { %v1550_v53 = vpop.f32.mrf.mxu0 }
 0x1e3   : > { %v1588_v54 = vpop.f32.mrf.mxu1  ;;  %v1551_v57 = vadd.f32 %v1550_v53, %v1549_v48 }
 0x1e4   : > { %v1552_v60 = vpop.f32.mrf.mxu0  ;;  %v1589_v63 = vadd.f32 %v1588_v54, %v1587_v49 }
 0x1e5   : > { %v1590_v61 = vpop.f32.mrf.mxu1  ;;  %v998_v62 = vadd.f32 %v1551_v57, %v923_v55 }
 0x1e6   : > { %v1553_v3 = vpop.f32.mrf.mxu0 }
 0x1e7   : > { %v1591_v4 = vpop.f32.mrf.mxu1  ;;  %v1073_v8 = vadd.f32 %v1589_v63, %v998_v62  ;;  %v1554_v9 = vadd.f32 %v1553_v3, %v1552_v60 }
 0x1e8   : > { %v1592_v14 = vadd.f32 %v1591_v4, %v1590_v61 }
 0x1e9   : > { %v1003_v13 = vadd.f32 %v1554_v9, %v928_v7  ;;  %v1112_v15 = vmul.f32 %v1346_v5, %v1073_v8  ;;  %v1091_v16 = vmul.f32 %v1344_v6, %v1073_v8 }
 0x1eb   : > { %v1078_v17 = vadd.f32 %v1592_v14, %v1003_v13  ;;  %v1114_v18 = vadd.f32 %v1112_v15, %v1106_v11  ;;  %v1093_v19 = vadd.f32 %v1091_v16, %v1085_v12 }
 0x1ed   : > { %1116 = vadd.xlane.f32.xlu1 %v1114_v18  ;;  %1095 = vadd.xlane.f32.xlu0 %v1093_v19  ;;  %v1113_v21 = vmul.f32 %v1346_v5, %v1078_v17  ;;  %v1092_v23 = vmul.f32 %v1344_v6, %v1078_v17 }
 0x1ef   : > { %v1115_v24 = vadd.f32 %v1113_v21, %v1107_v20  ;;  %v1094_v25 = vadd.f32 %v1092_v23, %v1086_v22 }
 0x1f1   : > { %1118 = vadd.xlane.f32.xlu1 %v1115_v24  ;;  %1097 = vadd.xlane.f32.xlu0 %v1094_v25 }
 0x276   : > { %v1117_v28 = vpop.xlane.xlu1 %1116  ;;  %v1096_v29 = vpop.xlane.xlu0 %1095 }
 0x277   : > { %v1121_v30 = vadd.f32 %v1120_v26, %v1117_v28  ;;  %v1100_v31 = vadd.f32 %v1099_v27, %v1096_v29 }
 0x279   : > { %v1349_v32 = vmul.f32 -1.442695, %v1121_v30  ;;  %v1347_v33 = vmul.f32 -1.442695, %v1100_v31 }
 0x27a   : > { %v1119_v34 = vpop.xlane.xlu1 %1118  ;;  %v1098_v35 = vpop.xlane.xlu0 %1097 }
 0x27b   : > { %1687 = vpow2.f32 %v1349_v32  ;;  %v1122_v36 = vadd.f32 %v1120_v26, %v1119_v34  ;;  %v1101_v37 = vadd.f32 %v1099_v27, %v1098_v35 }
 0x27c   : > { %1689 = vpow2.f32 %v1347_v33 }
 0x27d   : > { %v1350_v38 = vmul.f32 -1.442695, %v1122_v36  ;;  %v1348_v39 = vmul.f32 -1.442695, %v1101_v37 }
 0x27f   : > { %1691 = vpow2.f32 %v1350_v38 }
 0x280   : > { %1693 = vpow2.f32 %v1348_v39 }
 0x288   : > { %v1688_v40 = vpop.eup %1687 }
 0x289   : > { %v1690_v41 = vpop.eup %1689  ;;  %v1141_v42 = vadd.f32 1.0, %v1688_v40 }
 0x28a   : > { %v1129_v43 = vadd.f32 1.0, %v1690_v41 }
 0x28b   : > { %1695 = vrcp.f32 %v1141_v42 }
 0x28c   : > { %v1692_v44 = vpop.eup %1691  ;;  %1697 = vrcp.f32 %v1129_v43 }
 0x28d   : > { %v1694_v45 = vpop.eup %1693  ;;  %v1142_v46 = vadd.f32 1.0, %v1692_v44 }
 0x28e   : > { %v1130_v47 = vadd.f32 1.0, %v1694_v45 }
 0x28f   : > { %1699 = vrcp.f32 %v1142_v46 }
 0x290   : > { %1701 = vrcp.f32 %v1130_v47 }
 0x298   : > { %v1696_v48 = vpop.eup %1695 }
 0x299   : > { %v1698_v49 = vpop.eup %1697  ;;  %v1151_v50 = vmul.f32 %v1696_v48, %v1073_v8 }
 0x29a   : > { %v1147_v51 = vmul.f32 %v1698_v49, %v2232_v58 }
 0x29b   : > { %1153 = vst [vmem:[%s380_s18 + $0x8] sm:$0xff] %v1151_v50 }
 0x29c   : > { %v1700_v52 = vpop.eup %1699  ;;  %1149 = vst [vmem:[%s380_s18] sm:$0xff] %v1147_v51  ;;  %1162 = sbr.rel (!%p2334_p0) target bundleno = 700 (0x2bc), region = 72 }
 0x29d   : > { %v1702_v53 = vpop.eup %1701  ;;  %v1152_v54 = vmul.f32 %v1700_v52, %v1078_v17 }
 0x29e   : > { %v1148_v55 = vmul.f32 %v1702_v53, %v2234_v10 }
 0x29f   : > { %1154 = vst [vmem:[%s380_s18 + $0x18] sm:$0xff] %v1152_v54 }
 0x2a0   : > { %1150 = vst [vmem:[%s380_s18 + $0x10] sm:$0xff] %v1148_v55 }
 0x2a1   : > { %s2345_s7 = smov (!%p1165_p10, %s1164_s7), 2 }
 0x2a2   : > { %s2247_s16 = sshll.u32 %s2345_s7, 8 }
 0x2a3   : > { %s1170_s3 = ssub.s32 512, %s2247_s16 }
 0x2a4   : > { %1171 = vsyncadd %s1156_s29, %s1170_s3  ;;  %p1355_p1 = scmp.ne.s32.totalorder %s2247_s16, 0  ;;  %s1364_s12 = sshll.u32 %s2001_s25, 9 }
 0x2a5   : > { %s2257_s20 = scalar_lea.hbm %s2310_s6, %s1364_s12  ;;  %s1177_s26 = sshll.u32 %s380_s18, 4  ;;  %s2259_s26 = int_to_ptr.vmem [resolvable:$true] %s1177_s26 }
 0x2a6   : > { %s1848_s0 = scalar_lea.vmem %s2259_s26, %s2247_s16  ;;  %s1942_s11 = smov [#allocation13]  }
 0x2a7   : > { %p1849_p3 = scmp.ne.s32.totalorder %s2259_s26, %s1848_s0  ;;  %s1852_s19 = sshll.u32 %s1942_s11, 4  ;;  %s1853_s19 = int_to_ptr.vmem [resolvable:$false] %s1852_s19 }
 0x2a8   : > { %s1854_s25 = scalar_lea.vmem %s1853_s19, 1024  ;;  %p1855_p8 = scmp.lt.s32.totalorder %s2259_s26, %s1853_s19 }
 0x2a9   : > { %p1850_p7 = pnand %p1849_p3, %p1355_p1  ;;  %p1856_p5 = scmp.lt.s32.totalorder %s1854_s25, %s1848_s0 }
 0x2ab   : > { %p1851_p9 = pneg %p1850_p7  ;;  %p1857_p4 = por %p1856_p5, %p1855_p8 }
 0x2ad   : > { %p1858_p6 = pnand %p1857_p4, %p1851_p9 }
 0x2af   : > { %1861 = shalt.err (!%p1858_p6)
}
 0x2b0   : > { %s1862_s8 = scalar_lea.hbm %s2257_s20, %s2247_s16  ;;  %s1866_s18 = scalar_lea.hbm %s2310_s6, 768 }
 0x2b1   : > { %p1863_p12 = scmp.ne.s32.totalorder %s2257_s20, %s1862_s8  ;;  %p1867_p0 = scmp.lt.s32.totalorder %s2257_s20, %s2310_s6 }
 0x2b2   : > { %p1868_p10 = scmp.lt.s32.totalorder %s1866_s18, %s1862_s8 }
 0x2b3   : > { %p1864_p13 = pnand %p1863_p12, %p1355_p1 }
 0x2b4   : > { %p1869_p3 = por %p1868_p10, %p1867_p0 }
 0x2b5   : > { %p1865_p2 = pneg %p1864_p13 }
 0x2b7   : > { %p1870_p7 = pnand %p1869_p3, %p1865_p2 }
 0x2b9   : > { %1873 = shalt.err (!%p1870_p7)
}
 0x2ba   : > { %s1943_s3 = smov 256   ;;  %s1944_s12 = smov 16  }
 0x2bb   : > { %1183 = dma.vmem_to_hbm [thread:$0]  (%p1355_p1), %s2259_s26, %s2247_s16, %s2257_s20, %s1156_s29, %s1943_s3, %s1943_s3, %s1944_s12  }
 0x2bc PF: > { %s1192_s9 = sand.u32 1, %s1916_s21   ;;  %p2335_p9 = scmp.ne.s32.totalorder %s2319_s10, 0 }
 0x2bd   : > { %s1193_s14 = scalar_lea.sflag [#allocation4], %s1192_s9 }
 0x2be   : > { %p1631_p8 = pnand %p1319_p11, %p2335_p9 }
 0x2c0   : > { %p1632_p5 = pneg %p1631_p8 }
 0x2c2   : > { %1911 = dma.done.wait (%p1632_p5), %s1193_s14, 512  }
 0x2c3   : > { %1913 = vsyncadd (%p1632_p5), %s1193_s14, 4294966784  ;;  %p24_p4 = scmp.ge.s32.totalorder %s2005_s27, 4   ;;  %s2336_s21 = smov %s1920_s22 }
 0x2c4   : > { %s2337_s22 = smov %s1924_s23  ;;  %s2338_s23 = smov %s2017_s30 }
 0x2c5   : > { %s2339_s24 = smov %s2005_s27  ;;  %26 = sbr.rel (!%p24_p4) target bundleno = 12 (0xc), region = 119 }
 0x2ca   :  { %1198 = vsyncpa [#allocation3], 1 }
 0x2cb   :  { %1200 = vsyncpa [#allocation3 + $0x1], 1 }
 0x2cc   :  { %1201 = vsyncpa [#allocation7], 1 }
 0x2cd   :  { %1203 = vsyncpa [#allocation7 + $0x1], 1 }
 0x2ce   :  { %1204 = vsyncpa [#allocation10], 1 }
 0x2cf   :  { %1205 = vsyncpa [#allocation4], 1 }
 0x2d0   :  { %1207 = vsyncpa [#allocation4 + $0x1], 1 }
 0x2d1   :  { %1208 = vsyncpa [#allocation5], 1 }
 0x2d2   :  { %1210 = vsyncpa [#allocation5 + $0x1], 1 }

</bundles_post_ra>
